<compile_context>
chip_gen: v6e
topology: v6e:2x2x1
jax: 0.10.0
libtpu: 0.0.40
codegen_flags: <defaults>
</compile_context>

<pallas_src>
import functools

import jax
import jax.numpy as jnp
from jax import lax
from jax.experimental import pallas as pl
from jax.experimental.pallas import tpu as pltpu


def _round_up(x, m):
    return ((x + m - 1) // m) * m


def _pick_tile(total, cap):
    """Largest multiple of 128 that divides `total` (itself a multiple of 128) and is <= cap."""
    cap = max(128, (cap // 128) * 128)
    best, t = 128, 128
    while t <= min(total, cap):
        if total % t == 0:
            best = t
        t += 128
    return best


def _default_exp_dtype():
    # bf16 exp only on bf16-capable EUP generations (v6e / v7x); f32 otherwise.
    try:
        kind = jax.devices()[0].device_kind.lower()
    except Exception:
        return jnp.float32
    if any(v in kind for v in ("v2", "v3", "v4", "v5")):
        return jnp.float32
    return jnp.bfloat16


def _self_attn_kernel(xq_ref, xk_ref, res_ref, mqk_ref, wv_ref, gamma_ref, o_ref,
                      qm_scr, m_scr, acc_scr, *,
                      c_out, n_valid, n_padded, kt, exp_dtype):
    j = pl.program_id(2)

    @pl.when(j == 0)
    def _init():
        # Fold the Q/K projection onto the query tile ONCE per (batch, query tile):
        # qm = (Wk'^T Wq') @ xq'  -> (Ca, TQ), kept in bf16 for the score matmuls.
        qm_scr[...] = jnp.dot(mqk_ref[...], xq_ref[0],
                              preferred_element_type=jnp.float32).astype(jnp.bfloat16)
        m_scr[...] = jnp.full_like(m_scr, -jnp.inf)
        acc_scr[...] = jnp.zeros_like(acc_scr)

    xk = xk_ref[0]                                                  # (Ca, KT) bf16

    # Scores for this key tile, produced directly in (KT, TQ) layout (no transpose):
    # s_t[m, n] = k_m . q_n
    s_t = lax.dot_general(xk, qm_scr[...],
                          dimension_numbers=(((0,), (0,)), ((), ())),
                          preferred_element_type=jnp.float32)       # (KT, TQ) f32

    if n_valid < n_padded:
        # Mask spatial-padding keys (code only generated when N % 128 != 0).
        key_idx = lax.broadcasted_iota(jnp.int32, s_t.shape, 0) + j * kt
        s_t = jnp.where(key_idx < n_valid, s_t, -jnp.inf)

    # Value projection for this key tile. The last active row of wv' selects the
    # augmented ones-row of x', so dot(v, p) below also produces sum(p) (the
    # softmax denominator) as an extra accumulator row -> no per-step reduction.
    v = jnp.dot(wv_ref[...], xk,
                preferred_element_type=jnp.float32).astype(jnp.bfloat16)   # (Ca, KT)

    # Online softmax over the key axis (keys on sublanes, queries on lanes).
    m_prev = m_scr[...]                                             # (1, TQ)
    m_new = jnp.maximum(m_prev, jnp.max(s_t, axis=0, keepdims=True))
    alpha = jnp.exp(m_prev - m_new)                                 # (1, TQ)
    p = jnp.exp((s_t - m_new).astype(exp_dtype))                    # (KT, TQ)
    acc_scr[...] = alpha * acc_scr[...] + jnp.dot(
        v, p.astype(jnp.bfloat16), preferred_element_type=jnp.float32)     # (Ca, TQ)
    m_scr[...] = m_new

    @pl.when(j == pl.num_programs(2) - 1)
    def _finalize():
        denom = acc_scr[c_out:c_out + 1, :]                         # (1, TQ) = sum(p)
        inv_l = pl.reciprocal(denom, approx=False)
        out = gamma_ref[0] * (acc_scr[:c_out, :] * inv_l) + res_ref[0]
        o_ref[0] = out.astype(o_ref.dtype)


def self_attention_block(x_nchw, wq, bq, wk, bk, wv, bv, gamma, *,
                         key_block=512, query_block=512, exp_dtype=None):
    """x_nchw: (B, C, H, W); wq/wk: (C//8, C); wv: (C, C); biases: (Cout, 1); gamma: (1,)."""
    B, C, H, W = x_nchw.shape
    N = H * W
    Np = _round_up(N, 128)            # spatial axis padded to a lane multiple
    Ca = _round_up(C + 1, 16)         # augmented channels, bf16 sublane friendly

    if exp_dtype is None:
        exp_dtype = _default_exp_dtype()

    x = x_nchw.reshape(B, C, N).astype(jnp.float32)

    # f32 residual view (keeps `gamma * out + x` exact), padded along N.
    x_res = jnp.pad(x, ((0, 0), (0, 0), (0, Np - N))) if Np > N else x    # (B, C, Np)

    # Augmented activations, built directly in bf16: rows = [x ; ones ; zero pad].
    x_aug = jnp.concatenate(
        [x.astype(jnp.bfloat16),
         jnp.ones((B, 1, N), jnp.bfloat16),
         jnp.zeros((B, Ca - C - 1, N), jnp.bfloat16)], axis=1)            # (B, Ca, N)
    if Np > N:
        x_aug = jnp.pad(x_aug, ((0, 0), (0, 0), (0, Np - N)))             # (B, Ca, Np)

    def _augment(w, b):
        cout = w.shape[0]
        return jnp.concatenate(
            [w.astype(jnp.float32), b.reshape(cout, 1).astype(jnp.float32),
             jnp.zeros((cout, Ca - C - 1), jnp.float32)], axis=1)

    wq_a = _augment(wq, bq)                                   # (Cq, Ca)
    wk_a = _augment(wk, bk)                                   # (Cq, Ca)
    # Folded Q/K projection, applied to the query side inside the kernel.
    m_fold = (wk_a.T @ wq_a).astype(jnp.bfloat16)             # (Ca, Ca)

    # Augmented value weights; row C selects the ones-row of x' so the PV matmul
    # also yields the softmax denominator as accumulator row C.
    wv_a = jnp.zeros((Ca, Ca), jnp.float32)
    wv_a = wv_a.at[:C, :C].set(wv.astype(jnp.float32))
    wv_a = wv_a.at[:C, C].set(bv.reshape(C).astype(jnp.float32))
    wv_a = wv_a.at[C, C].set(1.0)
    wv_b = wv_a.astype(jnp.bfloat16)                          # (Ca, Ca)

    gamma_s = jnp.asarray(gamma, jnp.float32).reshape((1,))

    tq = _pick_tile(Np, query_block)
    kt = _pick_tile(Np, key_block)
    nq = Np // tq
    nkv = Np // kt

    kernel = functools.partial(_self_attn_kernel, c_out=C, n_valid=N, n_padded=Np,
                               kt=kt, exp_dtype=exp_dtype)

    # VMEM budget from the actual tile sizes (double-buffered blocks + scratch),
    # clamped so v7x (64 MiB physical) keeps headroom.
    vmem_bytes = (2 * (Ca * tq * 2 + Ca * kt * 2 + C * tq * 4 + C * tq * 4
                       + 2 * Ca * Ca * 2)
                  + Ca * tq * 2 + 8 * tq * 4 + Ca * tq * 4)
    vmem_limit = int(min(max(2 * vmem_bytes + (4 << 20), 32 << 20), 56 << 20))

    flops = 2 * B * (nq * Ca * Ca * Np          # folded query projection
                     + Ca * Np * Np             # scores
                     + nq * Ca * Ca * Np        # value projection (per query tile)
                     + Ca * Np * Np)            # PV + denominator
    transcendentals = B * (Np * Np + nq * Np)
    bytes_accessed = (2 * B * Ca * Np * (1 + nq)   # bf16 x' (query + key streams)
                      + 4 * B * C * Np             # f32 residual
                      + 4 * B * C * Np             # f32 output
                      + 2 * 2 * Ca * Ca + 4)

    out = pl.pallas_call(
        kernel,
        out_shape=jax.ShapeDtypeStruct((B, C, Np), jnp.float32),
        grid_spec=pltpu.PrefetchScalarGridSpec(
            num_scalar_prefetch=0,
            grid=(B, nq, nkv),
            in_specs=[
                pl.BlockSpec((1, Ca, tq), lambda b, q, j: (b, 0, q)),   # queries (bf16)
                pl.BlockSpec((1, Ca, kt), lambda b, q, j: (b, 0, j)),   # keys/values (bf16)
                pl.BlockSpec((1, C, tq), lambda b, q, j: (b, 0, q)),    # f32 residual
                pl.BlockSpec((Ca, Ca), lambda b, q, j: (0, 0)),         # folded Wk'^T Wq'
                pl.BlockSpec((Ca, Ca), lambda b, q, j: (0, 0)),         # augmented Wv'
                pl.BlockSpec(memory_space=pltpu.MemorySpace.SMEM),      # gamma scalar
            ],
            out_specs=pl.BlockSpec((1, C, tq), lambda b, q, j: (b, 0, q)),
            scratch_shapes=[
                pltpu.VMEM((Ca, tq), jnp.bfloat16),   # folded query projection
                pltpu.VMEM((1, tq), jnp.float32),     # running max
                pltpu.VMEM((Ca, tq), jnp.float32),    # PV accumulator + denom row
            ],
        ),
        compiler_params=pltpu.CompilerParams(
            dimension_semantics=("parallel", "parallel", "arbitrary"),
            vmem_limit_bytes=vmem_limit,
        ),
        cost_estimate=pl.CostEstimate(
            flops=flops, transcendentals=transcendentals,
            bytes_accessed=bytes_accessed),
    )(x_aug, x_aug, x_res, m_fold, wv_b, gamma_s)

    return out[:, :, :N].reshape(B, C, H, W)


def _reference(x_nchw, wq, bq, wk, bk, wv, bv, gamma):
    B, C, H, W = x_nchw.shape
    N = H * W
    x = x_nchw.reshape(B, C, N)
    q = jnp.einsum("oc,bcn->bon", wq, x) + bq[None]      # (B, Cq, N)
    k = jnp.einsum("oc,bcn->bon", wk, x) + bk[None]
    v = jnp.einsum("oc,bcn->bon", wv, x) + bv[None]
    s = jnp.einsum("bqn,bqm->bnm", q, k)                 # (B, N, N)
    a = jax.nn.softmax(s, axis=-1)
    out = jnp.einsum("bcm,bnm->bcn", v, a)               # (B, C, N)
    out = gamma * out + x
    return out.reshape(B, C, H, W)


if __name__ == "__main__":
    def make_case(key, B, C, H, W):
        Cq = max(C // 8, 1)
        ks = jax.random.split(key, 7)
        x = jax.random.normal(ks[0], (B, C, H, W), dtype=jnp.float32)
        wq = jax.random.normal(ks[1], (Cq, C), dtype=jnp.float32) * 0.1
        bq = jax.random.normal(ks[2], (Cq, 1), dtype=jnp.float32) * 0.1
        wk = jax.random.normal(ks[3], (Cq, C), dtype=jnp.float32) * 0.1
        bk = jax.random.normal(ks[4], (Cq, 1), dtype=jnp.float32) * 0.1
        wv = jax.random.normal(ks[5], (C, C), dtype=jnp.float32) * 0.1
        bv = jax.random.normal(ks[6], (C, 1), dtype=jnp.float32) * 0.1
        # gamma is zero-initialized in the module; nonzero here so the attention
        # path is actually exercised in this synthetic test.
        gamma = jnp.array([0.5], dtype=jnp.float32)
        return x, (wq, bq, wk, bk, wv, bv, gamma)

    k1, k2 = jax.random.split(jax.random.PRNGKey(0))

    # Case 1: lane-aligned spatial size; multiple query and key tiles.
    x, params = make_case(k1, B=2, C=32, H=16, W=16)       # N = 256
    fn = jax.jit(functools.partial(self_attention_block,
                                   key_block=128, query_block=128))
    y = jax.block_until_ready(fn(x, *params))
    y_ref = _reference(x, *params)
    err = float(jnp.max(jnp.abs(y - y_ref)))
    assert jnp.allclose(y, y_ref, atol=1e-2, rtol=1e-2), f"case1 max err {err}"

    # Case 2: spatial size NOT a multiple of 128 (exercises padding + key masking).
    x2, params2 = make_case(k2, B=1, C=16, H=12, W=12)     # N = 144 -> padded to 256
    fn2 = jax.jit(functools.partial(self_attention_block,
                                    key_block=128, query_block=128))
    y2 = jax.block_until_ready(fn2(x2, *params2))
    y2_ref = _reference(x2, *params2)
    err2 = float(jnp.max(jnp.abs(y2 - y2_ref)))
    assert jnp.allclose(y2, y2_ref, atol=1e-2, rtol=1e-2), f"case2 max err {err2}"

    print("KERNEL_OK")
</pallas_src>

<mosaic_0001>
module attributes {stable_mosaic.version = 11 : i64} {
  func.func @_self_attn_kernel(%arg0: i32, %arg1: i32, %arg2: i32, %arg3: memref<1x48x128xbf16, #tpu.memory_space<vmem>>, %arg4: memref<1x48x128xbf16, #tpu.memory_space<vmem>>, %arg5: memref<1x32x128xf32, #tpu.memory_space<vmem>>, %arg6: memref<48x48xbf16, #tpu.memory_space<vmem>>, %arg7: memref<48x48xbf16, #tpu.memory_space<vmem>>, %arg8: memref<1xf32, #tpu.memory_space<smem>>, %arg9: memref<1x32x128xf32, #tpu.memory_space<vmem>>, %arg10: memref<48x128xbf16, #tpu.memory_space<vmem>>, %arg11: memref<1x128xf32, #tpu.memory_space<vmem>>, %arg12: memref<48x128xf32, #tpu.memory_space<vmem>>) attributes {dimension_semantics = [#tpu.dimension_semantics<parallel>, #tpu.dimension_semantics<parallel>, #tpu.dimension_semantics<arbitrary>], iteration_bounds = array<i64: 2, 2, 2>, scalar_prefetch = 0 : i64, scratch_operands = 3 : i64, tpu.core_type = #tpu.core_type<tc>, window_params = [{transform_indices = @transform_0, window_bounds = array<i64: 1, 48, 128>}, {transform_indices = @transform_1, window_bounds = array<i64: 1, 48, 128>}, {transform_indices = @transform_2, window_bounds = array<i64: 1, 32, 128>}, {pipeline_mode = #tpu.pipeline_mode<synchronous>, transform_indices = @transform_3, window_bounds = array<i64: 48, 48>}, {pipeline_mode = #tpu.pipeline_mode<synchronous>, transform_indices = @transform_4, window_bounds = array<i64: 48, 48>}, {transform_indices = @transform_5, window_bounds = array<i64: 1>}, {transform_indices = @transform_6, window_bounds = array<i64: 1, 32, 128>}]} {
    %c0_i32 = arith.constant 0 : i32
    %0 = arith.cmpi eq, %arg2, %c0_i32 : i32
    %1 = arith.extui %0 : i1 to i32
    %c0_i32_0 = arith.constant 0 : i32
    %2 = arith.cmpi ne, %1, %c0_i32_0 : i32
    scf.if %2 {
      %c0_19 = arith.constant 0 : index
      %c0_20 = arith.constant 0 : index
      %30 = vector.load %arg6[%c0_19, %c0_20] : memref<48x48xbf16, #tpu.memory_space<vmem>>, vector<48x48xbf16>
      %c0_21 = arith.constant 0 : index
      %c0_22 = arith.constant 0 : index
      %c0_23 = arith.constant 0 : index
      %31 = vector.load %arg3[%c0_21, %c0_22, %c0_23] : memref<1x48x128xbf16, #tpu.memory_space<vmem>>, vector<1x48x128xbf16>
      %32 = vector.shape_cast %31 : vector<1x48x128xbf16> to vector<48x128xbf16>
      %cst_24 = arith.constant dense<0.000000e+00> : vector<48x128xf32>
      %33 = tpu.matmul %30, %32, %cst_24 {dimension_numbers = #tpu.dot_dimension_numbers<[1], [0], [0], [1], [0, 0, 1, 1], [], []>} : vector<48x48xbf16>, vector<48x128xbf16>, vector<48x128xf32> -> vector<48x128xf32>
      %34 = arith.truncf %33 : vector<48x128xf32> to vector<48x128xbf16>
      %c0_25 = arith.constant 0 : index
      %c0_26 = arith.constant 0 : index
      %35 = vector.load %arg10[%c0_25, %c0_26] : memref<48x128xbf16, #tpu.memory_space<vmem>>, vector<48x128xbf16>
      tpu.vector_store %arg10[%c0_25, %c0_26], %34 {strides = array<i32>} : memref<48x128xbf16, #tpu.memory_space<vmem>>, vector<48x128xbf16>,
      %cst_27 = arith.constant 0xFF800000 : f32
      %36 = vector.broadcast %cst_27 : f32 to vector<1x128xf32>
      %c0_28 = arith.constant 0 : index
      %c0_29 = arith.constant 0 : index
      %37 = vector.load %arg11[%c0_28, %c0_29] : memref<1x128xf32, #tpu.memory_space<vmem>>, vector<1x128xf32>
      tpu.vector_store %arg11[%c0_28, %c0_29], %36 {strides = array<i32>} : memref<1x128xf32, #tpu.memory_space<vmem>>, vector<1x128xf32>,
      %cst_30 = arith.constant 0.000000e+00 : f32
      %38 = vector.broadcast %cst_30 : f32 to vector<48x128xf32>
      %c0_31 = arith.constant 0 : index
      %c0_32 = arith.constant 0 : index
      %39 = vector.load %arg12[%c0_31, %c0_32] : memref<48x128xf32, #tpu.memory_space<vmem>>, vector<48x128xf32>
      tpu.vector_store %arg12[%c0_31, %c0_32], %38 {strides = array<i32>} : memref<48x128xf32, #tpu.memory_space<vmem>>, vector<48x128xf32>,
    } else {
    }
    %c0 = arith.constant 0 : index
    %c0_1 = arith.constant 0 : index
    %c0_2 = arith.constant 0 : index
    %3 = vector.load %arg4[%c0, %c0_1, %c0_2] : memref<1x48x128xbf16, #tpu.memory_space<vmem>>, vector<1x48x128xbf16>
    %4 = vector.shape_cast %3 : vector<1x48x128xbf16> to vector<48x128xbf16>
    %c0_3 = arith.constant 0 : index
    %c0_4 = arith.constant 0 : index
    %5 = vector.load %arg10[%c0_3, %c0_4] : memref<48x128xbf16, #tpu.memory_space<vmem>>, vector<48x128xbf16>
    %cst = arith.constant dense<0.000000e+00> : vector<128x128xf32>
    %6 = tpu.matmul %4, %5, %cst {dimension_numbers = #tpu.dot_dimension_numbers<[0], [0], [1], [1], [0, 1, 1, 1], [], []>} : vector<48x128xbf16>, vector<48x128xbf16>, vector<128x128xf32> -> vector<128x128xf32>
    %c0_5 = arith.constant 0 : index
    %c0_6 = arith.constant 0 : index
    %7 = vector.load %arg7[%c0_5, %c0_6] : memref<48x48xbf16, #tpu.memory_space<vmem>>, vector<48x48xbf16>
    %cst_7 = arith.constant dense<0.000000e+00> : vector<48x128xf32>
    %8 = tpu.matmul %7, %4, %cst_7 {dimension_numbers = #tpu.dot_dimension_numbers<[1], [0], [0], [1], [0, 0, 1, 1], [], []>} : vector<48x48xbf16>, vector<48x128xbf16>, vector<48x128xf32> -> vector<48x128xf32>
    %9 = arith.truncf %8 : vector<48x128xf32> to vector<48x128xbf16>
    %c0_8 = arith.constant 0 : index
    %c0_9 = arith.constant 0 : index
    %10 = vector.load %arg11[%c0_8, %c0_9] : memref<1x128xf32, #tpu.memory_space<vmem>>, vector<1x128xf32>
    %cst_10 = arith.constant dense<0xFF800000> : vector<128xf32>
    %11 = vector.multi_reduction <maximumf>, %6, %cst_10 [0] : vector<128x128xf32> to vector<128xf32>
    %12 = vector.shape_cast %11 : vector<128xf32> to vector<1x128xf32>
    %13 = arith.maximumf %10, %12 : vector<1x128xf32>
    %14 = arith.subf %10, %13 : vector<1x128xf32>
    %15 = math.exp %14 : vector<1x128xf32>
    %16 = vector.broadcast %13 : vector<1x128xf32> to vector<128x128xf32>
    %17 = arith.subf %6, %16 : vector<128x128xf32>
    %18 = arith.truncf %17 : vector<128x128xf32> to vector<128x128xbf16>
    %19 = math.exp %18 : vector<128x128xbf16>
    %c0_11 = arith.constant 0 : index
    %c0_12 = arith.constant 0 : index
    %20 = vector.load %arg12[%c0_11, %c0_12] : memref<48x128xf32, #tpu.memory_space<vmem>>, vector<48x128xf32>
    %21 = vector.broadcast %15 : vector<1x128xf32> to vector<48x128xf32>
    %22 = arith.mulf %21, %20 : vector<48x128xf32>
    %cst_13 = arith.constant dense<0.000000e+00> : vector<48x128xf32>
    %23 = tpu.matmul %9, %19, %cst_13 {dimension_numbers = #tpu.dot_dimension_numbers<[1], [0], [0], [1], [0, 0, 1, 1], [], []>} : vector<48x128xbf16>, vector<128x128xbf16>, vector<48x128xf32> -> vector<48x128xf32>
    %24 = arith.addf %22, %23 : vector<48x128xf32>
    %c0_14 = arith.constant 0 : index
    %c0_15 = arith.constant 0 : index
    %25 = vector.load %arg12[%c0_14, %c0_15] : memref<48x128xf32, #tpu.memory_space<vmem>>, vector<48x128xf32>
    tpu.vector_store %arg12[%c0_14, %c0_15], %24 {strides = array<i32>} : memref<48x128xf32, #tpu.memory_space<vmem>>, vector<48x128xf32>,
    %c0_16 = arith.constant 0 : index
    %c0_17 = arith.constant 0 : index
    %26 = vector.load %arg11[%c0_16, %c0_17] : memref<1x128xf32, #tpu.memory_space<vmem>>, vector<1x128xf32>
    tpu.vector_store %arg11[%c0_16, %c0_17], %13 {strides = array<i32>} : memref<1x128xf32, #tpu.memory_space<vmem>>, vector<1x128xf32>,
    %c1_i32 = arith.constant 1 : i32
    %27 = arith.cmpi eq, %arg2, %c1_i32 : i32
    %28 = arith.extui %27 : i1 to i32
    %c0_i32_18 = arith.constant 0 : i32
    %29 = arith.cmpi ne, %28, %c0_i32_18 : i32
    scf.if %29 {
      %c32 = arith.constant 32 : index
      %c0_19 = arith.constant 0 : index
      %30 = vector.load %arg12[%c32, %c0_19] : memref<48x128xf32, #tpu.memory_space<vmem>>, vector<1x128xf32>
      %31 = tpu.reciprocal %30 : vector<1x128xf32> -> vector<1x128xf32>
      %c0_20 = arith.constant 0 : index
      %32 = memref.load %arg8[%c0_20] : memref<1xf32, #tpu.memory_space<smem>>
      %c0_21 = arith.constant 0 : index
      %c0_22 = arith.constant 0 : index
      %33 = vector.load %arg12[%c0_21, %c0_22] : memref<48x128xf32, #tpu.memory_space<vmem>>, vector<32x128xf32>
      %34 = vector.broadcast %31 : vector<1x128xf32> to vector<32x128xf32>
      %35 = arith.mulf %33, %34 : vector<32x128xf32>
      %36 = vector.broadcast %32 : f32 to vector<32x128xf32>
      %37 = arith.mulf %36, %35 : vector<32x128xf32>
      %c0_23 = arith.constant 0 : index
      %c0_24 = arith.constant 0 : index
      %c0_25 = arith.constant 0 : index
      %38 = vector.load %arg5[%c0_23, %c0_24, %c0_25] : memref<1x32x128xf32, #tpu.memory_space<vmem>>, vector<1x32x128xf32>
      %39 = vector.shape_cast %38 : vector<1x32x128xf32> to vector<32x128xf32>
      %40 = arith.addf %37, %39 : vector<32x128xf32>
      %c0_26 = arith.constant 0 : index
      %c0_27 = arith.constant 0 : index
      %c0_28 = arith.constant 0 : index
      %41 = vector.load %arg9[%c0_26, %c0_27, %c0_28] : memref<1x32x128xf32, #tpu.memory_space<vmem>>, vector<1x32x128xf32>
      %42 = vector.shape_cast %41 : vector<1x32x128xf32> to vector<32x128xf32>
      %43 = vector.shape_cast %40 : vector<32x128xf32> to vector<1x32x128xf32>
      tpu.vector_store %arg9[%c0_26, %c0_27, %c0_28], %43 {strides = array<i32>} : memref<1x32x128xf32, #tpu.memory_space<vmem>>, vector<1x32x128xf32>,
    } else {
    }
    return
  }
  func.func @transform_0(%arg0: i32, %arg1: i32, %arg2: i32) -> (i32, i32, i32) {
    %c0_i32 = arith.constant 0 : i32
    %c0_i32_0 = arith.constant 0 : i32
    return %arg0, %c0_i32, %arg1 : i32, i32, i32
  }
  func.func @transform_1(%arg0: i32, %arg1: i32, %arg2: i32) -> (i32, i32, i32) {
    %c0_i32 = arith.constant 0 : i32
    %c0_i32_0 = arith.constant 0 : i32
    return %arg0, %c0_i32, %arg2 : i32, i32, i32
  }
  func.func @transform_2(%arg0: i32, %arg1: i32, %arg2: i32) -> (i32, i32, i32) {
    %c0_i32 = arith.constant 0 : i32
    %c0_i32_0 = arith.constant 0 : i32
    return %arg0, %c0_i32, %arg1 : i32, i32, i32
  }
  func.func @transform_3(%arg0: i32, %arg1: i32, %arg2: i32) -> (i32, i32) {
    %c0_i32 = arith.constant 0 : i32
    %c0_i32_0 = arith.constant 0 : i32
    %c0_i32_1 = arith.constant 0 : i32
    return %c0_i32, %c0_i32_0 : i32, i32
  }
  func.func @transform_4(%arg0: i32, %arg1: i32, %arg2: i32) -> (i32, i32) {
    %c0_i32 = arith.constant 0 : i32
    %c0_i32_0 = arith.constant 0 : i32
    %c0_i32_1 = arith.constant 0 : i32
    return %c0_i32, %c0_i32_0 : i32, i32
  }
  func.func @transform_5(%arg0: i32, %arg1: i32, %arg2: i32) -> i32 {
    %c0_i32 = arith.constant 0 : i32
    %c0_i32_0 = arith.constant 0 : i32
    return %c0_i32 : i32
  }
  func.func @transform_6(%arg0: i32, %arg1: i32, %arg2: i32) -> (i32, i32, i32) {
    %c0_i32 = arith.constant 0 : i32
    %c0_i32_0 = arith.constant 0 : i32
    return %arg0, %c0_i32, %arg1 : i32, i32, i32
  }
}

</mosaic_0001>

<bundles_post_ra>
// kernel: self_attention_block.1
= control target key start
LH: loop header
LB: loop body
LE: loop exit
PB: predicated region body
PF: predicated region fallthrough
CT: control target
= control target key end

     0   :  { %s2114_s0 = inlined_call_operand.vmem [shape: bf16[2,48,256], index: 0, kind: input, shape index: {}, may-alias: {0,1}]   ;;  %s2115_s1 = inlined_call_operand.vmem [shape: bf16[2,48,256], index: 1, kind: input, shape index: {}, may-alias: {0,1}]   ;;  %s2116_s2 = inlined_call_operand.vmem [shape: f32[2,32,256], index: 2, kind: input, shape index: {}]   ;;  %s2117_s3 = inlined_call_operand.vmem [shape: bf16[48,48], index: 3, kind: input, shape index: {}]   ;;  %s2118_s4 = inlined_call_operand.vmem [shape: bf16[48,48], index: 4, kind: input, shape index: {}]   ;;  %s2119_s5 = inlined_call_operand.<no memory space> [shape: f32[1], index: 5, kind: input, shape index: {}]   ;;  %s2120_s6 = inlined_call_operand.vmem [shape: f32[2,32,256], index: 6, kind: output, shape index: {}]  }
   0x1   :  { %2124 = sst [smem:[#allocation13_spill]] %s2120_s6 }
   0x2   :  { %11 = sst [smem:[#allocation5]] %s2119_s5 }
   0x3   :  { %s1786_s23 = smov 0   ;;  %s1788_s24 = smov 0  }
   0x4   :  { %s1790_s25 = smov 0   ;;  %s1792_s26 = smov 0  }
   0x5   :  { %s1794_s27 = smov 0   ;;  %s1796_s28 = smov 0  }
   0x6   :  { %s1798_s29 = smov 0   ;;  %s1800_s30 = smov 0  }
   0x7   :  { %s1802_s7 = smov 0   ;;  %s1804_s8 = smov 0  }
   0x8   :  { %s1806_s5 = smov 0  }
   0x9 LB: > { %s29_s9 = sadd.s32 1, %s1729_s30  ;;  %s32_s10 = sadd.s32 1, %s1733_s7  ;;  %s1741_s5 = sphi %s1806_s5, %s17_s5   ;;  %s1737_s8 = sphi %s1804_s8, %s2144_s8   ;;  %s1733_s7 = sphi %s1802_s7, %s2143_s7   ;;  %s1729_s30 = sphi %s1800_s30, %s2142_s30   ;;  %s1725_s29 = sphi %s1798_s29, %s2141_s29   ;;  %s1721_s28 = sphi %s1796_s28, %s2140_s28   ;;  %s1717_s27 = sphi %s1794_s27, %s2139_s27   ;;  %s1713_s26 = sphi %s1792_s26, %s2138_s26   ;;  %s1709_s25 = sphi %s1790_s25, %s2137_s25   ;;  %s1705_s24 = sphi %s1788_s24, %s2136_s24   ;;  %s1701_s23 = sphi %s1786_s23, %s2135_s23  }
   0xa   : > { %p30_p0 = scmp.ge.s32.totalorder %s29_s9, 2  ;;  %p52_p1 = scmp.ne.s32.totalorder %s1713_s26, %s1709_s25 }
   0xb   : > { %p53_p2 = scmp.eq.s32.totalorder %s1741_s5, 0  ;;  %s36_s11 = sadd.s32 1, %s1737_s8 }
   0xc   : > { %s2146_s9 = smov (%p30_p0, %s29_s9), 0  ;;  %s2148_s10 = smov (!%p30_p0, %s32_s10), %s1733_s7 }
   0xd   : > { %2125 = sst [smem:[#allocation10_spill]] %s2146_s9  ;;  %p34_p3 = scmp.ge.s32.totalorder %s2148_s10, 2 }
   0xe   : > { %s1301_s12 = sadd.s32 4294967295, %s1741_s5   ;;  %p1854_p4 = por %p53_p2, %p52_p1 }
   0xf   : > { %s2150_s10 = smov (%p34_p3, %s2148_s10), 0  ;;  %s2152_s11 = smov (!%p34_p3, %s36_s11), %s1737_s8 }
  0x10   : > { %2127 = sst [smem:[#allocation11_spill]] %s2150_s10  ;;  %s69_s14 = ssub.s32 %s1729_s30, %s2146_s9 }
  0x11   : > { %p80_p5 = scmp.ne.s32.totalorder %s1705_s24, %s1701_s23  ;;  %p38_p6 = scmp.ge.s32.totalorder %s2152_s11, 2 }
  0x12   : > { %p203_p7 = scmp.eq.s32.totalorder %s1301_s12, 7  ;;  %s41_s15 = ssub.s32 %s1733_s7, %s2150_s10 }
  0x13   : > { %p1867_p8 = por %p80_p5, %p53_p2  ;;  %s2154_s11 = smov (%p38_p6, %s2152_s11), 0 }
  0x14   : > { %2129 = sst [smem:[#allocation12_spill]] %s2154_s11  ;;  %s45_s17 = sadd.s32 1, %s1713_s26 }
  0x15   : > { %p1877_p9 = por %p203_p7, %p52_p1  ;;  %s40_s19 = ssub.s32 %s1737_s8, %s2154_s11 }
  0x16   : > { %s73_s20 = sadd.s32 1, %s1705_s24  ;;  %s42_s21 = sor.u32 %s41_s15, %s40_s19 }
  0x17   : > { %s70_s22 = sor.u32 %s69_s14, %s40_s19  ;;  %p43_p10 = scmp.eq.s32.totalorder %s42_s21, 0 }
  0x18   : > { %p71_p11 = scmp.eq.s32.totalorder %s70_s22, 0  ;;  %p1304_p12 = scmp.ge.s32.totalorder %s1741_s5, 8 }
  0x19   : > { %s1885_s12 = scalar_select %p43_p10, %s1713_s26, %s45_s17  }
  0x1a   : > { %s1888_s10 = scalar_select %p71_p11, %s1705_s24, %s73_s20  }
  0x1b   : > { %234 = sbr.rel (%p1304_p12) target bundleno = 62 (0x3e), region = 28 }
  0x20   : > { %237 = sbr.rel (!%p1854_p4) target bundleno = 43 (0x2b), region = 32  ;;  %s239_s9 = sand.u32 (%p1854_p4), 1, %s1713_s26  }
  0x21   : > { %s1521_s11 = smul.u32 (%p1854_p4), 12, %s1737_s8 }
  0x22   : > { %s1520_s6 = smul.u32 (%p1854_p4), 24, %s239_s9 }
  0x23   : > { %s243_s15 = sadd.s32 (%p1854_p4), %s1733_s7, %s1521_s11 }
  0x24   : > { %s1305_s14 = sshll.u32 (%p1854_p4), %s243_s15, 2  ;;  %s241_s20 = scalar_lea.vmem (%p1854_p4), [#allocation6], %s1520_s6 }
  0x25   : > { %s245_s17 = scalar_lea.vmem %s2114_s0, %s1305_s14 }
  0x26   : > { %v262_v0 = vld [vmem:[%s245_s17] sm:$0xf]  ;;  %v264_v1 = vld [vmem:[%s245_s17 + $0x8] sm:$0xf]  ;;  %v266_v2 = vld [vmem:[%s245_s17 + $0x10] sm:$0xf] }
  0x27   : > { %263 = vst [vmem:[%s241_s20] sm:$0xf] %v262_v0  ;;  %265 = vst [vmem:[%s241_s20 + $0x4] sm:$0xf] %v264_v1  ;;  %v268_v3 = vld [vmem:[%s245_s17 + $0x18] sm:$0xf] }
  0x28   : > { %267 = vst [vmem:[%s241_s20 + $0x8] sm:$0xf] %v266_v2  ;;  %v270_v4 = vld [vmem:[%s245_s17 + $0x20] sm:$0xf]  ;;  %v272_v5 = vld [vmem:[%s245_s17 + $0x28] sm:$0xf] }
  0x29   : > { %269 = vst [vmem:[%s241_s20 + $0xc] sm:$0xf] %v268_v3  ;;  %271 = vst [vmem:[%s241_s20 + $0x10] sm:$0xf] %v270_v4 }
  0x2a   : > { %273 = vst [vmem:[%s241_s20 + $0x14] sm:$0xf] %v272_v5 }
  0x2b PF: > { %309 = sbr.rel (!%p1867_p8) target bundleno = 54 (0x36), region = 73  ;;  %s311_s9 = sand.u32 (%p1867_p8), 1, %s1705_s24  }
  0x2c   : > { %s1523_s11 = smul.u32 (%p1867_p8), 12, %s1737_s8 }
  0x2d   : > { %s1522_s22 = smul.u32 (%p1867_p8), 24, %s311_s9 }
  0x2e   : > { %s315_s6 = sadd.s32 (%p1867_p8), %s1729_s30, %s1523_s11 }
  0x2f   : > { %s1306_s15 = sshll.u32 (%p1867_p8), %s315_s6, 2  ;;  %s313_s17 = scalar_lea.vmem (%p1867_p8), [#allocation7], %s1522_s22 }
  0x30   : > { %s317_s21 = scalar_lea.vmem %s2115_s1, %s1306_s15 }
  0x31   : > { %v334_v6 = vld [vmem:[%s317_s21] sm:$0xf]  ;;  %v336_v7 = vld [vmem:[%s317_s21 + $0x8] sm:$0xf]  ;;  %v338_v8 = vld [vmem:[%s317_s21 + $0x10] sm:$0xf] }
  0x32   : > { %335 = vst [vmem:[%s313_s17] sm:$0xf] %v334_v6  ;;  %337 = vst [vmem:[%s313_s17 + $0x4] sm:$0xf] %v336_v7  ;;  %v340_v9 = vld [vmem:[%s317_s21 + $0x18] sm:$0xf] }
  0x33   : > { %339 = vst [vmem:[%s313_s17 + $0x8] sm:$0xf] %v338_v8  ;;  %v342_v10 = vld [vmem:[%s317_s21 + $0x20] sm:$0xf]  ;;  %v344_v11 = vld [vmem:[%s317_s21 + $0x28] sm:$0xf] }
  0x34   : > { %341 = vst [vmem:[%s313_s17 + $0xc] sm:$0xf] %v340_v9  ;;  %343 = vst [vmem:[%s313_s17 + $0x10] sm:$0xf] %v342_v10 }
  0x35   : > { %345 = vst [vmem:[%s313_s17 + $0x14] sm:$0xf] %v344_v11 }
  0x36 PF: > { %381 = sbr.rel (!%p1854_p4) target bundleno = 62 (0x3e), region = 114  ;;  %s383_s16 = sand.u32 (%p1854_p4), 1, %s1713_s26  }
  0x37   : > { %s1308_s20 = sshll.u32 (%p1854_p4), %s1737_s8, 3  ;;  %s1307_s9 = sshll.u32 (%p1854_p4), %s383_s16, 5 }
  0x38   : > { %s387_s11 = sadd.s32 (%p1854_p4), %s1733_s7, %s1308_s20  ;;  %s385_s19 = scalar_lea.vmem (%p1854_p4), [#allocation8], %s1307_s9 }
  0x39   : > { %s1309_s22 = sshll.u32 (%p1854_p4), %s387_s11, 3 }
  0x3a   : > { %s389_s14 = scalar_lea.vmem (%p1854_p4), %s2116_s2, %s1309_s22 }
  0x3b   : > { %v424_v12 = vld [vmem:[%s389_s14] sm:$0xff]  ;;  %v426_v13 = vld [vmem:[%s389_s14 + $0x10] sm:$0xff] }
  0x3c   : > { %v428_v14 = vld [vmem:[%s389_s14 + $0x20] sm:$0xff]  ;;  %425 = vst [vmem:[%s385_s19] sm:$0xff] %v424_v12  ;;  %427 = vst [vmem:[%s385_s19 + $0x8] sm:$0xff] %v426_v13  ;;  %v430_v15 = vld [vmem:[%s389_s14 + $0x30] sm:$0xff] }
  0x3d   : > { %429 = vst [vmem:[%s385_s19 + $0x10] sm:$0xff] %v428_v14  ;;  %431 = vst [vmem:[%s385_s19 + $0x18] sm:$0xff] %v430_v15 }
  0x3e PF: > { %p1310_p13 = scmp.ge.s32.totalorder %s1741_s5, 1  ;;  %p436_p0 = scmp.lt.s32.totalorder %s1741_s5, 9 }
  0x40   : > { %p437_p1 = pnand %p1310_p13, %p436_p0 }
  0x41   : > { %s443_s13 = sand.u32 (!%p437_p1), 1, %s1709_s25   ;;  %s450_s21 = sand.u32 (!%p437_p1), 1, %s1701_s23  }
  0x42   : > { %440 = sbr.rel (%p437_p1) target bundleno = 944 (0x3b0), region = 152  ;;  %s1311_s16 = sshll.u32 (!%p437_p1), %s443_s13, 5 }
  0x43   : > { %s1524_s17 = smul.u32 (!%p437_p1), 24, %s443_s13  ;;  %s1921_s22 = scalar_lea.vmem (!%p437_p1), [#allocation8], %s1311_s16 }
  0x44   : > { %s1525_s20 = smul.u32 (!%p437_p1), 24, %s450_s21  ;;  %s1923_s6 = scalar_lea.vmem (!%p437_p1), [#allocation9], %s1311_s16 }
  0x45   : > { %s445_s9 = scalar_lea.vmem (!%p437_p1), [#allocation6], %s1524_s17  ;;  %p1313_p2 = scmp.ne.s32.totalorder (!%p437_p1), %s1717_s27, 0 }
  0x46   : > { %s1919_s11 = scalar_lea.vmem (!%p437_p1), [#allocation7], %s1525_s20 }
  0x47   : > { %497 = sbr.rel (%p1313_p2) target bundleno = 297 (0x129), region = 168 }
  0x4c   : > { %v1620_v16 = vld [vmem:[%s445_s9 + $0x10] sm:$0xff]   ;;  %v1743_v17 = vmov 0.0   ;;  %v1621_v18 = vld [vmem:[%s445_s9 + $0x8] sm:$0xff]   ;;  %vm1744_vm0 = vmmov 0   ;;  %v1622_v19 = vld [vmem:[%s445_s9] sm:$0xff]   ;;  %vm543_vm1 = vcmask 392192  }
  0x4d   : > { %1498 = vmatprep.subr.bf16.mxu1 %v1743_v17  ;;  %641 = vst [vmem:[#allocation4 + $0x28] sm:$0xff] %v1743_v17  ;;  %642 = vst [vmem:[#allocation4 + $0x10] sm:$0xff] %v1743_v17  ;;  %1412 = vmatprep.subr.bf16.mxu0 %v1743_v17  ;;  %v1623_v20 = vld [vmem:[%s2117_s3 + $0x8] sm:$0xff]   ;;  %v1624_v21 = vld [vmem:[%s2117_s3] sm:$0xff]   ;;  %v1745_v23 = vmov -inf  }
  0x4e   : > { %643 = vst [vmem:[#allocation4 + $0x8] sm:$0xff] %v1743_v17  ;;  %644 = vst [vmem:[#allocation4] sm:$0xff] %v1743_v17  ;;  %1501 = vmatpush3.bf16.msra.mxu1 %v1620_v16  ;;  %1413 = vmatpush3.bf16.msra.mxu0 %v1620_v16  ;;  %v1625_v22 = vld [vmem:[%s2117_s3 + $0x10] sm:$0xff]  }
  0x4f   : > { %645 = vst [vmem:[#allocation4 + $0x18] sm:$0xff] %v1743_v17  ;;  %646 = vst [vmem:[#allocation4 + $0x20] sm:$0xff] %v1743_v17  ;;  %1499 = vmatprep.subr.bf16.mxu1 %v1743_v17  ;;  %1414 = vmatprep.subr.bf16.mxu0 %v1743_v17 }
  0x50   : > { %1422 = vmatprep.mubr.msk.bf16.mxu1 %vm1744_vm0, %v1743_v17  ;;  %1418 = vmatprep.mubr.msk.bf16.mxu0 %vm1744_vm0, %v1743_v17  ;;  %640 = vst [vmem:[#allocation3] sm:$0x1] %v1745_v23 }
  0x52   : > { %1502 = vmatpush3.bf16.msra.mxu1 %v1621_v18  ;;  %1415 = vmatpush3.bf16.msra.mxu0 %v1621_v18 }
  0x53   : > { %1500 = vmatprep.subr.bf16.mxu1 %v1743_v17  ;;  %1416 = vmatprep.subr.bf16.mxu0 %v1743_v17 }
  0x56   : > { %1503 = vmatpush3.bf16.msra.mxu1 %v1622_v19  ;;  %1417 = vmatpush3.bf16.msra.mxu0 %v1622_v19 }
  0x59   : > { %1423 = vmatmul.mubr.msk.bf16.vlgmr.msra.gmra.mxu1 %vm543_vm1, %v1623_v20  ;;  %1419 = vmatmul.mubr.msk.bf16.vlgmr.msra.gmra.mxu0 %vm543_vm1, %v1624_v21 }
  0x5a   : > { %1426 = vmatprep.mubr.msk.bf16.mxu1 %vm1744_vm0, %v1743_v17 }
  0x61   : > { %1427 = vmatmul.mubr.msk.bf16.gmra.mxu1 %vm543_vm1, %v1625_v22 }
 0x119   : > { %v595_v24 = vpop.f32.mrf.mxu1  ;;  %v587_v25 = vpop.f32.mrf.mxu0 }
 0x11b   : > { %v1424_v26 = vpop.f32.mrf.mxu1  ;;  %v1420_v27 = vpop.f32.mrf.mxu0 }
 0x11d   : > { %v598_v28 = vpop.f32.mrf.mxu1  ;;  %v590_v29 = vpop.f32.mrf.mxu0 }
 0x11e   : > { %v1369_v30 = vpack.c.bf16 %v598_v28, %v595_v24  ;;  %v1364_v31 = vpack.c.bf16 %v590_v29, %v587_v25 }
 0x11f   : > { %v1425_v32 = vpop.f32.mrf.mxu1  ;;  %v1421_v33 = vpop.f32.mrf.mxu0 }
 0x120   : > { %1376 = vst [vmem:[#allocation2 + $0x8] sm:$0xff] %v1369_v30   ;;  %1365 = vst [vmem:[#allocation2] sm:$0xff] %v1364_v31  }
 0x121   : > { %v603_v34 = vpop.f32.mrf.mxu1 }
 0x123   : > { %v1428_v35 = vpop.f32.mrf.mxu1 }
 0x125   : > { %v606_v36 = vpop.f32.mrf.mxu1 }
 0x126   : > { %v1374_v37 = vpack.c.bf16 %v606_v36, %v603_v34 }
 0x127   : > { %v1429_v38 = vpop.f32.mrf.mxu1 }
 0x128   : > { %1377 = vst [vmem:[#allocation2 + $0x10] sm:$0xff] %v1374_v37  }
 0x129 PF: > { %v1626_v39 = vld [vmem:[%s1919_s11] sm:$0xff]   ;;  %v1627_v40 = vld [vmem:[%s1919_s11 + $0x8] sm:$0xff]   ;;  %v1628_v41 = vld [vmem:[%s1919_s11 + $0x10] sm:$0xff]   ;;  %v1746_v43 = vmov 0.0   ;;  %vm1747_vm2 = vmmov 0   ;;  %vm711_vm3 = vcmask 392192  }
 0x12a   : > { %677 = vxpose.xlu0.c.b16.start [1/3] (short) %v1626_v39, 128  ;;  %1452 = vmatprep.subr.bf16.mxu1 %v1746_v43  ;;  %v1630_v44 = vld [vmem:[#allocation2 + $0x8] sm:$0xff]   ;;  %v1631_v45 = vld [vmem:[#allocation2] sm:$0xff]   ;;  %v1634_v48 = vld [vmem:[%s2118_s4 + $0x10] sm:$0xff]   ;;  %p1349_p3 = scmp.ne.s32.totalorder %s1717_s27, 1 }
 0x12b   : > { %1453 = vmatpush3.bf16.msra.mxu1 %v1628_v41  ;;  %1458 = vmatprep.mubr.msk.bf16.mxu1 %vm1747_vm2, %v1746_v43  ;;  %v1632_v46 = vld [vmem:[%s2118_s4] sm:$0xff]   ;;  %v1633_v47 = vld [vmem:[%s2118_s4 + $0x8] sm:$0xff]   ;;  %s1097_s23 = sld [smem:[#allocation5]] (!%p1349_p3) }
 0x12c   : > { %1454 = vmatprep.subr.bf16.mxu1 %v1746_v43 }
 0x12e   : > { %678 = vxpose.xlu0.c.b16.cont [2/3] (short) %v1627_v40, 128 }
 0x12f   : > { %v1629_v42 = vld [vmem:[#allocation2 + $0x10] sm:$0xff]   ;;  %1455 = vmatpush3.bf16.msra.mxu1 %v1627_v40 }
 0x130   : > { %1430 = vmatprep.subr.bf16.mxu0 %v1629_v42  ;;  %1456 = vmatprep.subr.bf16.mxu1 %v1746_v43 }
 0x131   : > { %1431 = vmatpush3.bf16.msra.mxu0 %v1629_v42 }
 0x132   : > { %1432 = vmatprep.subr.bf16.mxu0 %v1630_v44  ;;  %679 = vxpose.xlu0.c.b16.end [3/3] (short) %v1628_v41, 128  ;;  %v950_v41 = vlaneseq }
 0x133   : > { %1457 = vmatpush3.bf16.msra.mxu1 %v1626_v39 }
 0x134   : > { %1504 = vmatprep.subr.bf16.mxu1 %v1746_v43 }
 0x135   : > { %1433 = vmatpush3.bf16.msra.mxu0 %v1630_v44 }
 0x136   : > { %1434 = vmatprep.subr.bf16.mxu0 %v1631_v45  ;;  %1459 = vmatmul.mubr.msk.bf16.vlgmr.msra.gmra.mxu1 %vm711_vm3, %v1632_v46 }
 0x137   : > { %1462 = vmatprep.mubr.msk.bf16.mxu1 %vm1747_vm2, %v1746_v43 }
 0x139   : > { %1435 = vmatpush3.bf16.msra.mxu0 %v1631_v45  ;;  %v951_v45 = vshrl.u32 %v950_v41, 7  ;;  %v1003_v41 = vld [vmem:[#allocation4 + $0x28] sm:$0xff] }
 0x13a   : > { %1470 = vmatprep.subr.bf16.mxu0 %v1746_v43 }
 0x13e   : > { %1463 = vmatmul.mubr.msk.bf16.gmra.mxu1 %vm711_vm3, %v1633_v47  ;;  %v923_v47 = vld [vmem:[#allocation3] sm:$0x1] }
 0x13f   : > { %1466 = vmatprep.mubr.msk.bf16.mxu1 %vm1747_vm2, %v1746_v43 }
 0x146   : > { %1467 = vmatmul.mubr.msk.bf16.gmra.mxu1 %vm711_vm3, %v1634_v48 }
 0x147   : > { %1490 = vmatprep.mubr.msk.bf16.mxu1 %vm1747_vm2, %v1746_v43 }
 0x18c   : > { %v685_v49 = vpop.trf.xlu0 }
 0x18d   : > { %1436 = vmatprep.mubr.msk.bf16.mxu0 %vm711_vm3, %v685_v49  ;;  %v2015_v49 = vsub.s32 0, %v951_v45 }
 0x190   : > { %v686_v50 = vpop.trf.xlu0 }
 0x191   : > { %1437 = vmatmul.mubr.msk.bf16.vlgmr.msra.gmra.mxu0 %vm711_vm3, %v686_v50 }
 0x194   : > { %v687_v51 = vpop.trf.xlu0 }
 0x195   : > { %1440 = vmatprep.mubr.msk.bf16.mxu0 %vm711_vm3, %v687_v51 }
 0x198   : > { %v688_v52 = vpop.trf.xlu0 }
 0x199   : > { %1441 = vmatmul.mubr.msk.bf16.gmra.mxu0 %vm711_vm3, %v688_v52 }
 0x19c   : > { %v689_v53 = vpop.trf.xlu0 }
 0x19d   : > { %1444 = vmatprep.mubr.msk.bf16.mxu0 %vm711_vm3, %v689_v53 }
 0x1a0   : > { %v690_v54 = vpop.trf.xlu0 }
 0x1a1   : > { %1445 = vmatmul.mubr.msk.bf16.gmra.mxu0 %vm711_vm3, %v690_v54 }
 0x1a4   : > { %v691_v55 = vpop.trf.xlu0 }
 0x1a5   : > { %1448 = vmatprep.mubr.msk.bf16.mxu0 %vm711_vm3, %v691_v55 }
 0x1a8   : > { %v692_v56 = vpop.trf.xlu0 }
 0x1a9   : > { %1449 = vmatmul.mubr.msk.bf16.gmra.mxu0 %vm711_vm3, %v692_v56 }
 0x1aa   : > { %1486 = vmatprep.mubr.msk.bf16.mxu0 %vm1747_vm2, %v1746_v43 }
 0x1f6   : > { %v1973_v57 = vpop.f32.mrf.mxu1 }
 0x1f8   : > { %v1460_v58 = vpop.f32.mrf.mxu1 }
 0x1fa   : > { %v1975_v59 = vpop.f32.mrf.mxu1 }
 0x1fb   : > { %v920_v60 = vpack.c.bf16 %v1975_v59, %v1973_v57  ;;  %v1004_v59 = vld [vmem:[#allocation4 + $0x10] sm:$0xff] }
 0x1fc   : > { %v1461_v61 = vpop.f32.mrf.mxu1 }
 0x1fe   : > { %v1979_v62 = vpop.f32.mrf.mxu1 }
 0x200   : > { %v1464_v63 = vpop.f32.mrf.mxu1 }
 0x202   : > { %v1981_v0 = vpop.f32.mrf.mxu1 }
 0x203   : > { %v921_v1 = vpack.c.bf16 %v1981_v0, %v1979_v62 }
 0x204   : > { %v1465_v2 = vpop.f32.mrf.mxu1 }
 0x206   : > { %v1985_v3 = vpop.f32.mrf.mxu1 }
 0x208   : > { %v1468_v4 = vpop.f32.mrf.mxu1 }
 0x20a   : > { %v1987_v5 = vpop.f32.mrf.mxu1 }
 0x20b   : > { %v922_v6 = vpack.c.bf16 %v1987_v5, %v1985_v3 }
 0x20c   : > { %v1469_v7 = vpop.f32.mrf.mxu1 }
 0x251   : > { %v1991_v8 = vpop.f32.mrf.mxu0 }
 0x253   : > { %v1993_v9 = vpop.f32.mrf.mxu0 }
 0x255   : > { %v1995_v10 = vpop.f32.mrf.mxu0 }
 0x257   : > { %v1997_v11 = vpop.f32.mrf.mxu0 }
 0x259   : > { %v1999_v12 = vpop.f32.mrf.mxu0 }
 0x25a   : > { %v926_v23 = vmax.f32 %v1991_v8, %v1999_v12 }
 0x25b   : > { %v2001_v13 = vpop.f32.mrf.mxu0 }
 0x25c   : > { %v924_v24 = vmax.f32 %v1993_v9, %v2001_v13 }
 0x25d   : > { %v2003_v14 = vpop.f32.mrf.mxu0 }
 0x25e   : > { %v927_v21 = vmax.f32 %v1995_v10, %v2003_v14 }
 0x25f   : > { %v2005_v15 = vpop.f32.mrf.mxu0 }
 0x260   : > { %v925_v25 = vmax.f32 %v1997_v11, %v2005_v15 }
 0x261   : > { %v1446_v16 = vpop.f32.mrf.mxu0 }
 0x262   : > { %v930_v28 = vmax.f32 %v926_v23, %v1446_v16 }
 0x263   : > { %v802_v17 = vpop.f32.mrf.mxu0 }
 0x264   : > { %v928_v29 = vmax.f32 %v924_v24, %v802_v17 }
 0x265   : > { %v1447_v18 = vpop.f32.mrf.mxu0 }
 0x266   : > { %v931_v26 = vmax.f32 %v927_v21, %v1447_v18 }
 0x267   : > { %v805_v19 = vpop.f32.mrf.mxu0 }
 0x268   : > { %v929_v30 = vmax.f32 %v925_v25, %v805_v19 }
 0x269   : > { %v1450_v20 = vpop.f32.mrf.mxu0 }
 0x26a   : > { %v934_v33 = vmax.f32 %v930_v28, %v1450_v20 }
 0x26b   : > { %v818_v22 = vpop.f32.mrf.mxu0 }
 0x26c   : > { %v932_v34 = vmax.f32 %v928_v29, %v818_v22 }
 0x26d   : > { %v1451_v27 = vpop.f32.mrf.mxu0 }
 0x26e   : > { %v935_v31 = vmax.f32 %v931_v26, %v1451_v27 }
 0x26f   : > { %v821_v32 = vpop.f32.mrf.mxu0 }
 0x270   : > { %v933_v35 = vmax.f32 %v929_v30, %v821_v32  ;;  %v937_v36 = vmax.f32 %v934_v33, %v935_v31 }
 0x272   : > { %v936_v37 = vmax.f32 %v932_v34, %v933_v35 }
 0x274   : > { %v938_v38 = vmax.f32 %v936_v37, %v937_v36 }
 0x276   : > { %v939_v39 = vrot.slane %v938_v38, 4 }
 0x278   : > { %v940_v40 = vmax.f32 %v938_v38, %v939_v39 }
 0x27a   : > { %v941_v42 = vrot.slane %v940_v40, 2 }
 0x27c   : > { %v942_v44 = vmax.f32 %v940_v40, %v941_v42  ;;  %v1005_v42 = vld [vmem:[#allocation4 + $0x8] sm:$0xff] }
 0x27e   : > { %v943_v46 = vrot.slane %v942_v44, 1 }
 0x280   : > { %v944_v48 = vmax.f32 %v942_v44, %v943_v46 }
 0x282   : > { %v945_v50 = vmax.f32 %v923_v47, %v944_v48  ;;  %v1007_v48 = vld [vmem:[#allocation4 + $0x18] sm:$0xff] }
 0x284   : > { %v946_v51 = vsub.f32 %v923_v47, %v945_v50  ;;  %v953_v52 = vrot.slane %v945_v50, %v2015_v49  ;;  %1090 = vst [vmem:[#allocation3] sm:$0x1] %v945_v50 }
 0x286   : > { %v947_v53 = vmul.f32 1.442695, %v946_v51  ;;  %v967_v54 = vsub.f32 %v818_v22, %v953_v52  ;;  %v968_v55 = vsub.f32 %v821_v32, %v953_v52  ;;  %v969_v56 = vsub.f32 %v1450_v20, %v953_v52 }
 0x287   : > { %v970_v58 = vsub.f32 %v1451_v27, %v953_v52  ;;  %v965_v61 = vsub.f32 %v1446_v16, %v953_v52  ;;  %v966_v63 = vsub.f32 %v1447_v18, %v953_v52  ;;  %v957_v7 = vsub.f32 %v1991_v8, %v953_v52 }
 0x288   : > { %1635 = vpow2.f32 %v947_v53  ;;  %v977_v2 = vpack.c.bf16 %v968_v55, %v967_v54  ;;  %v958_v23 = vsub.f32 %v1995_v10, %v953_v52  ;;  %v963_v25 = vsub.f32 %v802_v17, %v953_v52 }
 0x289   : > { %v978_v4 = vpack.c.bf16 %v970_v58, %v969_v56  ;;  %v976_v24 = vpack.c.bf16 %v966_v63, %v965_v61  ;;  %v964_v26 = vsub.f32 %v805_v19, %v953_v52  ;;  %v955_v28 = vsub.f32 %v1993_v9, %v953_v52  ;;  %v1008_v56 = vld [vmem:[#allocation4 + $0x20] sm:$0xff] }
 0x28a   : > { %v998_v29 = vmul.bf16 1069105081, %v977_v2  ;;  %v972_v22 = vpack.c.bf16 %v958_v23, %v957_v7  ;;  %v956_v20 = vsub.f32 %v1997_v11, %v953_v52  ;;  %v961_v16 = vsub.f32 %v1999_v12, %v953_v52 }
 0x28b   : > { %v1001_v21 = vmul.bf16 1069105081, %v978_v4  ;;  %v995_v18 = vmul.bf16 1069105081, %v976_v24  ;;  %v975_v30 = vpack.c.bf16 %v964_v26, %v963_v25  ;;  %v962_v8 = vsub.f32 %v2003_v14, %v953_v52 }
 0x28c   : > { %v971_v27 = vpack.c.bf16 %v956_v20, %v955_v28  ;;  %v959_v10 = vsub.f32 %v2001_v13, %v953_v52  ;;  %v960_v9 = vsub.f32 %v2005_v15, %v953_v52  ;;  %v983_v15 = vmul.bf16 1069105081, %v972_v22 }
 0x28d   : > { %1637 = vpow.bf16 %v1001_v21  ;;  %v992_v17 = vmul.bf16 1069105081, %v975_v30  ;;  %v974_v19 = vpack.c.bf16 %v962_v8, %v961_v16 }
 0x28e   : > { %1639 = vpow.bf16 %v998_v29  ;;  %v973_v33 = vpack.c.bf16 %v960_v9, %v959_v10  ;;  %v980_v35 = vmul.bf16 1069105081, %v971_v27 }
 0x28f   : > { %1641 = vpow.bf16 %v995_v18  ;;  %v989_v11 = vmul.bf16 1069105081, %v974_v19 }
 0x290   : > { %1643 = vpow.bf16 %v992_v17  ;;  %v986_v13 = vmul.bf16 1069105081, %v973_v33 }
 0x291   : > { %1645 = vpow.bf16 %v989_v11 }
 0x292   : > { %1647 = vpow.bf16 %v986_v13 }
 0x293   : > { %1649 = vpow.bf16 %v983_v15 }
 0x294   : > { %1651 = vpow.bf16 %v980_v35 }
 0x295   : > { %v1636_v31 = vpop.eup %1635 }
 0x296   : > { %v2027_v32 = vrot.slane %v1636_v31, %v2015_v49 }
 0x298   : > { %v1015_v44 = vmul.f32 %v2027_v32, %v1003_v41  ;;  %v1017_v45 = vmul.f32 %v2027_v32, %v1005_v42  ;;  %v1019_v54 = vmul.f32 %v2027_v32, %v1007_v48  ;;  %v1020_v63 = vmul.f32 %v2027_v32, %v1008_v56 }
 0x29b   : > { %v1638_v12 = vpop.eup %1637 }
 0x29c   : > { %1471 = vmatpush3.bf16.msra.mxu0 %v1638_v12  ;;  %1512 = vmatpush3.bf16.msra.mxu1 %v1638_v12  ;;  %v1640_v14 = vpop.eup %1639 }
 0x29d   : > { %1472 = vmatprep.subr.bf16.mxu0 %v1746_v43  ;;  %1505 = vmatprep.subr.bf16.mxu1 %v1746_v43  ;;  %v1642_v34 = vpop.eup %1641 }
 0x29e   : > { %v1644_v36 = vpop.eup %1643 }
 0x29f   : > { %v1646_v37 = vpop.eup %1645 }
 0x2a0   : > { %1473 = vmatpush3.bf16.msra.mxu0 %v1640_v14  ;;  %1513 = vmatpush3.bf16.msra.mxu1 %v1640_v14  ;;  %v1648_v38 = vpop.eup %1647 }
 0x2a1   : > { %1474 = vmatprep.subr.bf16.mxu0 %v1746_v43  ;;  %1506 = vmatprep.subr.bf16.mxu1 %v1746_v43  ;;  %v1650_v39 = vpop.eup %1649 }
 0x2a2   : > { %v1652_v40 = vpop.eup %1651 }
 0x2a4   : > { %1475 = vmatpush3.bf16.msra.mxu0 %v1642_v34  ;;  %1514 = vmatpush3.bf16.msra.mxu1 %v1642_v34 }
 0x2a5   : > { %1476 = vmatprep.subr.bf16.mxu0 %v1746_v43  ;;  %1507 = vmatprep.subr.bf16.mxu1 %v1746_v43 }
 0x2a8   : > { %1477 = vmatpush3.bf16.msra.mxu0 %v1644_v36  ;;  %1515 = vmatpush3.bf16.msra.mxu1 %v1644_v36 }
 0x2a9   : > { %1478 = vmatprep.subr.bf16.mxu0 %v1746_v43  ;;  %1508 = vmatprep.subr.bf16.mxu1 %v1746_v43 }
 0x2ac   : > { %1479 = vmatpush3.bf16.msra.mxu0 %v1646_v37  ;;  %1516 = vmatpush3.bf16.msra.mxu1 %v1646_v37 }
 0x2ad   : > { %1480 = vmatprep.subr.bf16.mxu0 %v1746_v43  ;;  %1509 = vmatprep.subr.bf16.mxu1 %v1746_v43 }
 0x2b0   : > { %1481 = vmatpush3.bf16.msra.mxu0 %v1648_v38  ;;  %1517 = vmatpush3.bf16.msra.mxu1 %v1648_v38 }
 0x2b1   : > { %1482 = vmatprep.subr.bf16.mxu0 %v1746_v43  ;;  %1510 = vmatprep.subr.bf16.mxu1 %v1746_v43 }
 0x2b4   : > { %1483 = vmatpush3.bf16.msra.mxu0 %v1650_v39  ;;  %1518 = vmatpush3.bf16.msra.mxu1 %v1650_v39 }
 0x2b5   : > { %1484 = vmatprep.subr.bf16.mxu0 %v1746_v43  ;;  %1511 = vmatprep.subr.bf16.mxu1 %v1746_v43 }
 0x2b8   : > { %1485 = vmatpush3.bf16.msra.mxu0 %v1652_v40  ;;  %1519 = vmatpush3.bf16.msra.mxu1 %v1652_v40 }
 0x2bb   : > { %1487 = vmatmul.mubr.bf16.vlgmr.msra.gmra.mxu0 %v920_v60  ;;  %1491 = vmatmul.mubr.bf16.vlgmr.msra.gmra.mxu1 %v921_v1  ;;  %v1006_v60 = vld [vmem:[#allocation4] sm:$0xff] }
 0x2bc   : > { %1494 = vmatprep.mubr.msk.bf16.mxu1 %vm1747_vm2, %v1746_v43  ;;  %v1016_v43 = vmul.f32 %v2027_v32, %v1004_v59  ;;  %v1018_v3 = vmul.f32 %v2027_v32, %v1006_v60 }
 0x2c3   : > { %1495 = vmatmul.mubr.bf16.gmra.mxu1 %v922_v6 }
 0x37b   : > { %v1055_v46 = vpop.f32.mrf.mxu0  ;;  %v1063_v57 = vpop.f32.mrf.mxu1 }
 0x37c   : > { %v1078_v47 = vadd.f32 %v1055_v46, %v1015_v44  ;;  %v1080_v62 = vadd.f32 %v1063_v57, %v1017_v45 }
 0x37d   : > { %v1488_v0 = vpop.f32.mrf.mxu0  ;;  %v1492_v1 = vpop.f32.mrf.mxu1 }
 0x37e   : > { %1084 = vst [vmem:[#allocation4 + $0x28] sm:$0xff] %v1078_v47  ;;  %1086 = vst [vmem:[#allocation4 + $0x8] sm:$0xff] %v1080_v62 }
 0x37f   : > { %v1058_v5 = vpop.f32.mrf.mxu0  ;;  %v1066_v6 = vpop.f32.mrf.mxu1 }
 0x380   : > { %v1079_v50 = vadd.f32 %v1058_v5, %v1016_v43  ;;  %v1081_v51 = vadd.f32 %v1066_v6, %v1018_v3 }
 0x381   : > { %v1489_v52 = vpop.f32.mrf.mxu0  ;;  %v1493_v53 = vpop.f32.mrf.mxu1 }
 0x382   : > { %1085 = vst [vmem:[#allocation4 + $0x10] sm:$0xff] %v1079_v50  ;;  %1087 = vst [vmem:[#allocation4] sm:$0xff] %v1081_v51 }
 0x383   : > { %v1071_v55 = vpop.f32.mrf.mxu1 }
 0x384   : > { %v1082_v58 = vadd.f32 %v1071_v55, %v1019_v54 }
 0x385   : > { %v1496_v61 = vpop.f32.mrf.mxu1 }
 0x386   : > { %1088 = vst [vmem:[#allocation4 + $0x18] sm:$0xff] %v1082_v58  ;;  %1094 = sbr.rel (%p1349_p3) target bundleno = 934 (0x3a6), region = 172 }
 0x387   : > { %v1074_v2 = vpop.f32.mrf.mxu1 }
 0x388   : > { %v1083_v4 = vadd.f32 %v1074_v2, %v1020_v63 }
 0x389   : > { %v1497_v7 = vpop.f32.mrf.mxu1 }
 0x38a   : > { %1089 = vst [vmem:[#allocation4 + $0x20] sm:$0xff] %v1083_v4 }
 0x38b   : > { %v1098_v23 = vld [vmem:[#allocation4 + $0x28] sm:$0xff]  ;;  %v1099_v25 = vld [vmem:[#allocation4 + $0x10] sm:$0xff]  ;;  %v1101_v28 = vld [vmem:[#allocation4] sm:$0xff]  ;;  %v1110_v22 = vstv %s1097_s23 }
 0x38c   : > { %v1100_v26 = vld [vmem:[#allocation4 + $0x8] sm:$0xff]  ;;  %v1115_v27 = vld [vmem:[%s1921_s22] sm:$0xff]  ;;  %v1116_v8 = vld [vmem:[%s1921_s22 + $0x8] sm:$0xff] }
 0x38d   : > { %v1095_v21 = vld [vmem:[#allocation4 + $0x18] sm:$0x1]  ;;  %v1117_v10 = vld [vmem:[%s1921_s22 + $0x10] sm:$0xff]  ;;  %v1118_v31 = vld [vmem:[%s1921_s22 + $0x18] sm:$0xff] }
 0x38e   : > { %1653 = vrcp.f32 %v1095_v21 }
 0x39b   : > { %v1654_v24 = vpop.eup %1653 }
 0x39c   : > { %v1105_v29 = vrot.slane %v1654_v24, %v2015_v49 }
 0x39e   : > { %v1106_v20 = vmul.f32 %v1105_v29, %v1098_v23  ;;  %v1107_v16 = vmul.f32 %v1105_v29, %v1099_v25  ;;  %v1108_v18 = vmul.f32 %v1105_v29, %v1100_v26  ;;  %v1109_v30 = vmul.f32 %v1105_v29, %v1101_v28 }
 0x3a0   : > { %v1111_v17 = vmul.f32 %v1110_v22, %v1106_v20  ;;  %v1112_v19 = vmul.f32 %v1110_v22, %v1107_v16  ;;  %v1113_v9 = vmul.f32 %v1110_v22, %v1108_v18  ;;  %v1114_v32 = vmul.f32 %v1110_v22, %v1109_v30 }
 0x3a2   : > { %v1119_v11 = vadd.f32 %v1115_v27, %v1111_v17  ;;  %v1120_v33 = vadd.f32 %v1116_v8, %v1112_v19  ;;  %v1121_v49 = vadd.f32 %v1117_v10, %v1113_v9  ;;  %v1122_v12 = vadd.f32 %v1118_v31, %v1114_v32 }
 0x3a4   : > { %1123 = vst [vmem:[%s1923_s6] sm:$0xff] %v1119_v11  ;;  %1124 = vst [vmem:[%s1923_s6 + $0x8] sm:$0xff] %v1120_v33 }
 0x3a5   : > { %1125 = vst [vmem:[%s1923_s6 + $0x10] sm:$0xff] %v1121_v49  ;;  %1126 = vst [vmem:[%s1923_s6 + $0x18] sm:$0xff] %v1122_v12 }
 0x3a6 PF: > { %1133 = sbr.rel (!%p1877_p9) target bundleno = 944 (0x3b0), region = 176  ;;  %s1351_s27 = sshll.u32 (%p1877_p9), %s1725_s29, 3 }
 0x3a7   : > { %s1135_s22 = sadd.s32 (%p1877_p9), %s1721_s28, %s1351_s27  ;;  %s2131_s19 = sld [smem:[#allocation13_spill]] (%p1877_p9) }
 0x3a8   : > { %s1352_s25 = sshll.u32 (%p1877_p9), %s1135_s22, 3 }
 0x3ab   : > { %v1172_v13 = vld [vmem:[%s1923_s6] sm:$0xff]  ;;  %v1174_v14 = vld [vmem:[%s1923_s6 + $0x8] sm:$0xff] }
 0x3ac   : > { %v1176_v15 = vld [vmem:[%s1923_s6 + $0x10] sm:$0xff]  ;;  %v1178_v34 = vld [vmem:[%s1923_s6 + $0x18] sm:$0xff] }
 0x3ad   : > { %s1137_s13 = scalar_lea.vmem %s2131_s19, %s1352_s25 }
 0x3ae   : > { %1173 = vst [vmem:[%s1137_s13] sm:$0xff] %v1172_v13  ;;  %1175 = vst [vmem:[%s1137_s13 + $0x10] sm:$0xff] %v1174_v14 }
 0x3af   : > { %1177 = vst [vmem:[%s1137_s13 + $0x20] sm:$0xff] %v1176_v15  ;;  %1179 = vst [vmem:[%s1137_s13 + $0x30] sm:$0xff] %v1178_v34 }
 0x3b0 PF: > { %s17_s5 = sadd.s32 1, %s1741_s5   ;;  %s2132_s18 = sld [smem:[#allocation10_spill]] }
 0x3b1   : > { %p14_p4 = scmp.ge.s32.totalorder %s17_s5, 10   ;;  %s2133_s6 = sld [smem:[#allocation11_spill]] }
 0x3b2   : > { %s2134_s21 = sld [smem:[#allocation12_spill]]  ;;  %s2135_s23 = smov %s1705_s24 }
 0x3b3   : > { %s2136_s24 = smov %s1888_s10  ;;  %s2137_s25 = smov %s1713_s26 }
 0x3b4   : > { %s2138_s26 = smov %s1885_s12  ;;  %s2139_s27 = smov %s1729_s30 }
 0x3b5   : > { %s2140_s28 = smov %s1733_s7  ;;  %s2141_s29 = smov %s1737_s8 }
 0x3b6   : > { %s2142_s30 = smov %s2132_s18  ;;  %16 = sbr.rel (!%p14_p4) target bundleno = 9 (0x9), region = 261 }
 0x3b7   : > { %s2143_s7 = smov %s2133_s6 }
 0x3b8   : > { %s2144_s8 = smov %s2134_s21 }

</bundles_post_ra>
